<compile_context>
chip_gen: v5e
topology: v5e:2x2
jax: 0.10.0
libtpu: 0.0.40
codegen_flags: <defaults>
</compile_context>

<pallas_src>
import numpy as np
import jax
import jax.numpy as jnp
from jax import lax
from jax.experimental import pallas as pl
from jax.experimental.pallas import tpu as pltpu

# Deterministic parameters from RBF.__init__(n_kernels=5, mul_factor=2.0, bandwidth=None)
N_KERNELS = 5
MUL_FACTOR = 2.0
BANDWIDTH_MULTIPLIERS = (
    MUL_FACTOR ** (np.arange(N_KERNELS) - N_KERNELS // 2)
).astype(np.float32)                             # [0.25, 0.5, 1.0, 2.0, 4.0]
_MAX_MULT = float(BANDWIDTH_MULTIPLIERS[-1])     # 4.0
assert MUL_FACTOR == 2.0  # repeated-squaring rewrite requires power-of-2 multipliers


def _bandwidth_scale_kernel(x_ref, scale_ref):
    """scale = -1 / (bandwidth * max_multiplier), computed in O(N*D)."""
    x = x_ref[...].astype(jnp.float32)                      # (N, D)
    n = x.shape[0]
    sum_sq = jnp.sum(x * x)                                 # sum_i ||x_i||^2
    col = jnp.sum(x, axis=0, keepdims=True)                 # (1, D) column sums
    # Exact closed form of sum_ij ||x_i - x_j||^2 — no N^2 reduction needed.
    total = 2.0 * n * sum_sq - 2.0 * jnp.sum(col * col)
    bandwidth = total / jnp.float32(n * n - n)
    scale = jnp.float32(-1.0 / _MAX_MULT) / bandwidth       # exact scalar divide
    scale_ref[...] = jnp.full((1, 1), scale, dtype=jnp.float32)


def _rbf_tile_kernel(scale_ref, xr_ref, xc_ref, o_ref):
    scale = scale_ref[0, 0]                                 # SMEM scalar: -1/(4*bandwidth)
    xr = xr_ref[...].astype(jnp.float32)                    # (bm, D) row block of X
    xc = xc_ref[...].astype(jnp.float32)                    # (bn, D) col block of X

    sq_r = jnp.sum(xr * xr, axis=-1, keepdims=True)         # (bm, 1)
    sq_c = jnp.sum(xc * xc, axis=-1)[None, :]               # (1, bn)
    # Gram tile without materializing a transpose: contract last dim with last dim.
    gram = lax.dot_general(xr, xc, (((1,), (1,)), ((), ())),
                           preferred_element_type=jnp.float32)   # (bm, bn) on MXU
    l2 = jnp.maximum(sq_r + sq_c - 2.0 * gram, 0.0)          # clamp fp cancellation noise

    # One EUP exp, the remaining 4 kernels by squaring on the VPU:
    #   term_0 = exp(-l2 / (bw * 4)), term_{k+1} = term_k^2
    #          = exp(-l2 / (bw * m)) for m = 4, 2, 1, 0.5, 0.25.
    term = jnp.exp(l2 * scale)
    acc = term                                               # no zeros-init pass
    for _ in range(N_KERNELS - 1):
        term = term * term
        acc = acc + term
    o_ref[...] = acc.astype(o_ref.dtype)


def rbf(x, *, block_rows=256, block_cols=256):
    """Pallas RBF forward.  x: (N, D) -> (N, N) float32."""
    n, d = x.shape
    bm = min(block_rows, n)
    bn = min(block_cols, n)

    # Pass 1: data-dependent bandwidth folded into one scale scalar (O(N*D)).
    # X is loaded whole; fine for the shapes this module is used with.
    scale = pl.pallas_call(
        _bandwidth_scale_kernel,
        out_shape=jax.ShapeDtypeStruct((1, 1), jnp.float32),
        grid=(1,),
        in_specs=[pl.BlockSpec((n, d), lambda i: (0, 0))],
        out_specs=pl.BlockSpec((1, 1), lambda i: (0, 0)),
    )(x)

    # Pass 2: tiled NxN kernel matrix.  Both grid axes are independent, so they
    # are marked "parallel" (megacore sharding on multi-TC chips, pipelined DMA
    # everywhere).  Output tiles are lane-dense (last dim = bn or full N).
    grid = (pl.cdiv(n, bm), pl.cdiv(n, bn))
    return pl.pallas_call(
        _rbf_tile_kernel,
        out_shape=jax.ShapeDtypeStruct((n, n), jnp.float32),
        grid=grid,
        in_specs=[
            pl.BlockSpec((1, 1), lambda i, j: (0, 0),
                         memory_space=pltpu.MemorySpace.SMEM),   # scale scalar
            pl.BlockSpec((bm, d), lambda i, j: (i, 0)),          # row block of X
            pl.BlockSpec((bn, d), lambda i, j: (j, 0)),          # col block of X
        ],
        out_specs=pl.BlockSpec((bm, bn), lambda i, j: (i, j)),
        compiler_params=pltpu.CompilerParams(
            dimension_semantics=("parallel", "parallel")),
    )(scale, x, x)


def rbf_reference(x):
    """Plain-JAX reference mirroring the PyTorch forward."""
    x = x.astype(jnp.float32)
    n = x.shape[0]
    diff = x[:, None, :] - x[None, :, :]
    l2 = jnp.sum(diff * diff, axis=-1)                       # cdist ** 2
    bandwidth = jnp.sum(l2) / (n * n - n)
    mults = jnp.asarray(BANDWIDTH_MULTIPLIERS)
    return jnp.sum(jnp.exp(-l2[None, ...] / (bandwidth * mults[:, None, None])), axis=0)


if __name__ == "__main__":
    key = jax.random.PRNGKey(0)
    k1, k2 = jax.random.split(key)

    # Small case: single output tile, grid (1, 1).
    x1 = jax.random.normal(k1, (64, 32), dtype=jnp.float32)
    out1 = rbf(x1)
    jax.block_until_ready(out1)
    ref1 = rbf_reference(x1)
    assert out1.shape == (64, 64)
    assert jnp.allclose(out1, ref1, atol=5e-4, rtol=5e-4), "mismatch vs reference (64x32)"

    # Multi-tile case: 2x2 grid of 128x128 output tiles exercises the tiled path.
    x2 = jax.random.normal(k2, (256, 32), dtype=jnp.float32)
    out2 = rbf(x2, block_rows=128, block_cols=128)
    jax.block_until_ready(out2)
    ref2 = rbf_reference(x2)
    assert out2.shape == (256, 256)
    assert jnp.allclose(out2, ref2, atol=5e-4, rtol=5e-4), "mismatch vs reference (256x32)"

    print("KERNEL_OK")
</pallas_src>

<mosaic_0001>
module attributes {stable_mosaic.version = 11 : i64} {
  func.func @_bandwidth_scale_kernel(%arg0: i32, %arg1: memref<64x32xf32, #tpu.memory_space<vmem>>, %arg2: memref<1x1xf32, #tpu.memory_space<vmem>>) attributes {dimension_semantics = [#tpu.dimension_semantics<arbitrary>], iteration_bounds = array<i64: 1>, scalar_prefetch = 0 : i64, scratch_operands = 0 : i64, tpu.core_type = #tpu.core_type<tc>, window_params = [{pipeline_mode = #tpu.pipeline_mode<synchronous>, transform_indices = @transform_0, window_bounds = array<i64: 64, 32>}, {pipeline_mode = #tpu.pipeline_mode<synchronous>, transform_indices = @transform_1, window_bounds = array<i64: 1, 1>}]} {
    %c0 = arith.constant 0 : index
    %c0_0 = arith.constant 0 : index
    %0 = vector.load %arg1[%c0, %c0_0] : memref<64x32xf32, #tpu.memory_space<vmem>>, vector<64x32xf32>
    %1 = arith.mulf %0, %0 : vector<64x32xf32>
    %2 = vector.shape_cast %1 : vector<64x32xf32> to vector<1x64x32xf32>
    %cst = arith.constant dense<0.000000e+00> : vector<1xf32>
    %3 = vector.multi_reduction <add>, %2, %cst [1, 2] : vector<1x64x32xf32> to vector<1xf32>
    %4 = vector.shape_cast %3 : vector<1xf32> to vector<1x1x1xf32>
    %5 = vector.extract %4[0, 0, 0] : f32 from vector<1x1x1xf32>
    %cst_1 = arith.constant dense<0.000000e+00> : vector<32xf32>
    %6 = vector.multi_reduction <add>, %0, %cst_1 [0] : vector<64x32xf32> to vector<32xf32>
    %7 = vector.shape_cast %6 : vector<32xf32> to vector<1x32xf32>
    %cst_2 = arith.constant 1.280000e+02 : f32
    %8 = arith.mulf %cst_2, %5 : f32
    %9 = arith.mulf %7, %7 : vector<1x32xf32>
    %10 = vector.shape_cast %9 : vector<1x32xf32> to vector<1x1x32xf32>
    %cst_3 = arith.constant dense<0.000000e+00> : vector<1xf32>
    %11 = vector.multi_reduction <add>, %10, %cst_3 [1, 2] : vector<1x1x32xf32> to vector<1xf32>
    %12 = vector.shape_cast %11 : vector<1xf32> to vector<1x1x1xf32>
    %13 = vector.extract %12[0, 0, 0] : f32 from vector<1x1x1xf32>
    %cst_4 = arith.constant 2.000000e+00 : f32
    %14 = arith.mulf %cst_4, %13 : f32
    %15 = arith.subf %8, %14 : f32
    %cst_5 = arith.constant 4.032000e+03 : f32
    %16 = arith.divf %15, %cst_5 : f32
    %cst_6 = arith.constant -2.500000e-01 : f32
    %17 = arith.divf %cst_6, %16 : f32
    %18 = vector.broadcast %17 : f32 to vector<1x1xf32>
    %c0_7 = arith.constant 0 : index
    %c0_8 = arith.constant 0 : index
    %19 = vector.load %arg2[%c0_7, %c0_8] : memref<1x1xf32, #tpu.memory_space<vmem>>, vector<1x1xf32>
    tpu.vector_store %arg2[%c0_7, %c0_8], %18 {strides = array<i32>} : memref<1x1xf32, #tpu.memory_space<vmem>>, vector<1x1xf32>,
    return
  }
  func.func @transform_0(%arg0: i32) -> (i32, i32) {
    %c0_i32 = arith.constant 0 : i32
    %c0_i32_0 = arith.constant 0 : i32
    %c0_i32_1 = arith.constant 0 : i32
    return %c0_i32, %c0_i32_0 : i32, i32
  }
  func.func @transform_1(%arg0: i32) -> (i32, i32) {
    %c0_i32 = arith.constant 0 : i32
    %c0_i32_0 = arith.constant 0 : i32
    %c0_i32_1 = arith.constant 0 : i32
    return %c0_i32, %c0_i32_0 : i32, i32
  }
}

</mosaic_0001>

<bundles_post_ra>
// kernel: tpu_custom_call.1
= control target key start
LH: loop header
LB: loop body
LE: loop exit
PB: predicated region body
PF: predicated region fallthrough
CT: control target
= control target key end

     0   :  { %vm25_vm0 = vcmask 261120   ;;  %s226_s0 = inlined_call_operand.vmem [shape: f32[64,32], index: 0, kind: input, shape index: {}]   ;;  %s227_s1 = inlined_call_operand.hbm [shape: f32[1,1], index: 1, kind: output, shape index: {}]  }
   0x1   :  { %v9_v0 = vld [vmem:[%s226_s0] sm:$0xff]  ;;  %v10_v1 = vld [vmem:[%s226_s0 + $0x8] sm:$0xff]  ;;  %v11_v2 = vld [vmem:[%s226_s0 + $0x10] sm:$0xff] }
   0x2   :  { %v12_v3 = vld [vmem:[%s226_s0 + $0x18] sm:$0xff]  ;;  %v13_v4 = vld [vmem:[%s226_s0 + $0x20] sm:$0xff]  ;;  %v17_v5 = vmul.f32 %v9_v0, %v9_v0  ;;  %v18_v6 = vmul.f32 %v10_v1, %v10_v1  ;;  %v19_v7 = vmul.f32 %v11_v2, %v11_v2  ;;  %v14_v8 = vld [vmem:[%s226_s0 + $0x28] sm:$0xff]  ;;  %v50_v10 = vsel %vm25_vm0, %v9_v0, 0.0 }
   0x3   :  { %v20_v9 = vmul.f32 %v12_v3, %v12_v3  ;;  %v51_v11 = vsel %vm25_vm0, %v10_v1, 0.0 }
   0x4   :  { %6 = vsyncpa [#allocation3], 0  ;;  %v21_v12 = vmul.f32 %v13_v4, %v13_v4  ;;  %v26_v13 = vsel %vm25_vm0, %v17_v5, 0.0  ;;  %v27_v14 = vsel %vm25_vm0, %v18_v6, 0.0  ;;  %v15_v15 = vld [vmem:[%s226_s0 + $0x30] sm:$0xff]  ;;  %v29_v17 = vsel %vm25_vm0, %v19_v7, 0.0 }
   0x5   :  { %v28_v16 = vadd.f32 %v27_v14, %v26_v13  ;;  %v22_v18 = vmul.f32 %v14_v8, %v14_v8  ;;  %v31_v19 = vsel %vm25_vm0, %v20_v9, 0.0  ;;  %v52_v20 = vadd.f32 %v51_v11, %v50_v10  ;;  %v16_v21 = vld [vmem:[%s226_s0 + $0x38] sm:$0xff]  ;;  %s172_s28 = smov [#allocation2]   ;;  %s122_s3 = sshll.u32 %s227_s1, 4  ;;  %s123_s3 = int_to_ptr.hbm [resolvable:$true] %s122_s3 }
   0x6   :  { %v53_v23 = vsel %vm25_vm0, %v11_v2, 0.0  ;;  %v55_v24 = vsel %vm25_vm0, %v12_v3, 0.0  ;;  %v23_v25 = vmul.f32 %v15_v15, %v15_v15  ;;  %v33_v26 = vsel %vm25_vm0, %v21_v12, 0.0  ;;  %s120_s29 = sshll.u32 %s172_s28, 4  ;;  %s121_s29 = int_to_ptr.vmem [resolvable:$true] %s120_s29 }
   0x7   :  { %v30_v22 = vadd.f32 %v29_v17, %v28_v16  ;;  %v54_v27 = vadd.f32 %v53_v23, %v52_v20  ;;  %v57_v29 = vsel %vm25_vm0, %v13_v4, 0.0  ;;  %v24_v30 = vmul.f32 %v16_v21, %v16_v21 }
   0x8   :  { %v35_v31 = vsel %vm25_vm0, %v22_v18, 0.0  ;;  %v59_v34 = vsel %vm25_vm0, %v14_v8, 0.0  ;;  %v37_v35 = vsel %vm25_vm0, %v23_v25, 0.0  ;;  %v61_v38 = vsel %vm25_vm0, %v15_v15, 0.0 }
   0x9   :  { %v32_v28 = vadd.f32 %v31_v19, %v30_v22  ;;  %v56_v32 = vadd.f32 %v55_v24, %v54_v27  ;;  %v39_v39 = vsel %vm25_vm0, %v24_v30, 0.0  ;;  %v63_v42 = vsel %vm25_vm0, %v16_v21, 0.0 }
   0xa   :  { %vm73_vm1 = vcmask 253952   ;;  %v171_v56 = vmov 4032.0   ;;  %vm113_vm7 = vcmask 0  }
   0xb   :  { %v34_v33 = vadd.f32 %v33_v26, %v32_v28  ;;  %v58_v36 = vadd.f32 %v57_v29, %v56_v32  ;;  %141 = vrcp.f32 %v171_v56 }
   0xd   :  { %v36_v37 = vadd.f32 %v35_v31, %v34_v33  ;;  %v60_v40 = vadd.f32 %v59_v34, %v58_v36 }
   0xf   :  { %v38_v41 = vadd.f32 %v37_v35, %v36_v37  ;;  %v62_v43 = vadd.f32 %v61_v38, %v60_v40 }
  0x11   :  { %v40_v44 = vadd.f32 %v39_v39, %v38_v41  ;;  %v64_v45 = vadd.f32 %v63_v42, %v62_v43  ;;  %v142_v60 = vpop.eup %141 }
  0x12   :  { %v87_v63 = vmul.f32 4032.0, %v142_v60  ;;  %vm91_vm2 = vweird.f32 %v142_v60 }
  0x13   :  { %41 = vadd.xlane.f32.xlu0 %v40_v44  ;;  %v65_v46 = vrot.slane %v64_v45, 4 }
  0x14   :  { %v88_v0 = vsub.f32 1.0, %v87_v63 }
  0x15   :  { %v66_v47 = vadd.f32 %v65_v46, %v64_v45 }
  0x16   :  { %v89_v4 = vmul.f32 %v142_v60, %v88_v0 }
  0x17   :  { %v67_v48 = vrot.slane %v66_v47, 2 }
  0x18   :  { %v90_v7 = vadd.f32 %v142_v60, %v89_v4 }
  0x19   :  { %v68_v49 = vadd.f32 %v67_v48, %v66_v47 }
  0x1a   :  { %v92_v10 = vsel %vm91_vm2, %v142_v60, %v90_v7 }
  0x1b   :  { %v69_v50 = vrot.slane %v68_v49, 1 }
  0x1d   :  { %v70_v51 = vadd.f32 %v69_v50, %v68_v49 }
  0x1f   :  { %v72_v52 = vmul.f32 %v70_v51, %v70_v51 }
  0x21   :  { %v74_v53 = vsel %vm73_vm1, %v72_v52, 0.0 }
  0x22   :  { %75 = vadd.xlane.f32.xlu0 %v74_v53 }
  0x86   :  { %v42_v54 = vpop.xlane.xlu0 %41 }
  0x87   :  { %v43_v55 = vrot.slane %v42_v54, 4 }
  0x89   :  { %v44_v57 = vadd.f32 %v43_v55, %v42_v54 }
  0x8b   :  { %v45_v58 = vrot.slane %v44_v57, 2 }
  0x8d   :  { %v46_v59 = vadd.f32 %v45_v58, %v44_v57 }
  0x8f   :  { %v47_v61 = vrot.slane %v46_v59, 1 }
  0x91   :  { %v48_v62 = vadd.f32 %v47_v61, %v46_v59 }
  0x93   :  { %131 = vpush %v48_v62 }
  0x95   :  { %v76_v1 = vpop.xlane.xlu0 %75 }
  0x96   :  { %v77_v2 = vrot.slane %v76_v1, 4 }
  0x98   :  { %v78_v3 = vadd.f32 %v77_v2, %v76_v1 }
  0x9a   :  { %v79_v5 = vrot.slane %v78_v3, 2 }
  0x9c   :  { %v80_v6 = vadd.f32 %v79_v5, %v78_v3 }
  0x9e   :  { %v81_v8 = vrot.slane %v80_v6, 1 }
  0xa0   :  { %v82_v9 = vadd.f32 %v81_v8, %v80_v6 }
  0xa2   :  { %133 = vpush %v82_v9 }
  0xa3   :  { %135 = vpush %v92_v10 }
  0xc4   :  { %s132_s0 = spop %131 }
  0xc5   :  { %s71_s22 = smul.f32 128.0, %s132_s0 }
  0xd3   :  { %s134_s23 = spop %133 }
  0xd4   :  { %s84_s24 = smul.f32 2.0, %s134_s23  ;;  %s136_s25 = spop %135 }
  0xd6   :  { %s85_s26 = ssub.f32 %s71_s22, %s84_s24 }
  0xd8   :  { %s94_s27 = smul.f32 %s136_s25, %s85_s26 }
  0xda   :  { %v95_v11 = vstv %s94_s27 }
  0xdb   :  { %143 = vrcp.f32 %v95_v11  ;;  %v107_v15 = vand.u32 2147483648, %v95_v11  ;;  %v105_v17 = vand.u32 2147483647, %v95_v11  ;;  %vm101_vm4 = vweird.f32 %v95_v11 }
  0xdd   :  { %v108_v19 = vor.u32 1.1754944e-38, %v107_v15  ;;  %vm106_vm6 = vcmp.eq.f32.partialorder %v105_v17, 8.507059e+37 }
  0xe1   :  { %v144_v12 = vpop.eup %143 }
  0xe2   :  { %v97_v13 = vmul.f32 %v144_v12, %v95_v11  ;;  %vm102_vm3 = vweird.f32 %v144_v12 }
  0xe3   :  { %vm103_vm5 = vmor %vm101_vm4, %vm102_vm3 }
  0xe4   :  { %v98_v14 = vsub.f32 1.0, %v97_v13 }
  0xe6   :  { %v99_v16 = vmul.f32 %v144_v12, %v98_v14 }
  0xe8   :  { %v100_v18 = vadd.f32 %v144_v12, %v99_v16 }
  0xea   :  { %v104_v20 = vsel %vm103_vm5, %v144_v12, %v100_v18 }
  0xeb   :  { %v109_v21 = vsel %vm106_vm6, %v108_v19, %v104_v20 }
  0xec   :  { %137 = vpush %v109_v21 }
 0x11d   :  { %s138_s4 = spop %137 }
 0x11e   :  { %s111_s5 = smul.f32 -0.25, %s138_s4 }
 0x120   :  { %v112_v22 = vstv %s111_s5 }
 0x121   :  { %114 = vst.msk [vmem:[#allocation2] sm:$0x1] %vm113_vm7, %v112_v22 }
 0x122   :  { %125 = dma.vmem_to_hbm [thread:$0]  %s121_s29, 16, %s123_s3, [#allocation3]  }
 0x123   :  { %169 = dma.done.wait [#allocation3], 16  }
 0x124   :  { %170 = vsyncadd [#allocation3], 4294967280 }
 0x125   :  { %130 = vsyncpa [#allocation3], 1 }

</bundles_post_ra>
